<compile_context>
chip_gen: v7x
topology: tpu7x:2x2x1
jax: 0.10.0
libtpu: 0.0.40
codegen_flags: <defaults>
</compile_context>

<pallas_src>
import functools

import jax
import jax.numpy as jnp
from jax import lax
from jax.experimental import pallas as pl
from jax.experimental.pallas import tpu as pltpu

_LANES = 128


def _round_up(x, m):
    return (x + m - 1) // m * m


def _fused_defense_kernel(x_ref, wp_ref, bp_ref, wc_ref, bc_ref, out_ref, *,
                          C, H, W):
    """One batch element: purify (3x3 residual conv + clip) then classify."""
    HW = H * W
    HWp = HW + 2 * (W + 1)

    x = x_ref[0]                                    # [C, HWp] f32 (zero halo)

    # Flat column index of every *source* element of the halo-padded row-major
    # image (halo values are already zero, so their column label is harmless).
    j = lax.broadcasted_iota(jnp.int32, (C, HWp), 1) - (W + 1)
    if W & (W - 1) == 0:
        src_col = j & (W - 1)           # == j mod W (also correct for j < 0)
    else:
        src_col = j % W
    # Pre-masked source copies (computed once, VPU):
    #   * left taps (dw==0) wrap onto flat column W-1 of the previous row when
    #     w==0; valid left reads never touch column W-1 -> zero it once.
    #   * right taps (dw==2) wrap onto flat column 0 of the next row when
    #     w==W-1; valid right reads never touch column 0 -> zero it once.
    x_l = jnp.where(src_col != (W - 1), x, 0.0)
    x_r = jnp.where(src_col != 0, x, 0.0)

    # ---- purifier: 3x3 "same" conv as 9 small MXU dots over lane-dense taps
    acc = jnp.zeros((C, HW), jnp.float32)
    for dh in range(3):
        for dw in range(3):
            src = x_l if dw == 0 else (x_r if dw == 2 else x)
            start = dh * W + dw                     # static lane offset
            tap = src[:, start:start + HW]          # [C, HW]
            # NOTE: for large, compute-bound shapes cast tap/weights to bf16
            # here (keep preferred_element_type=f32) on v6e/v7x; kept f32 at
            # these tiny sizes and for the v5e VPU path.
            acc = acc + jnp.dot(wp_ref[dh * 3 + dw], tap,
                                preferred_element_type=jnp.float32)

    center = x[:, W + 1:W + 1 + HW]                 # residual = un-shifted image
    purified = jnp.clip(acc + bp_ref[...] + center, 0.0, 1.0)     # [C, HW]

    # ---- classifier: NCHW-flattened linear head, f32 accumulator -----------
    logits = bc_ref[...].astype(jnp.float32)        # [1, P]  (128-lane padded)
    for c in range(C):                              # static, unrolled (C tiny)
        logits = logits + jnp.dot(purified[c:c + 1, :],
                                  wc_ref[pl.ds(c * HW, HW), :],
                                  preferred_element_type=jnp.float32)
    out_ref[0] = logits.astype(out_ref.dtype)       # single lane-dense store


def _build_fused_call(N, C, H, W, P):
    HW = H * W
    HWp = HW + 2 * (W + 1)

    kernel = functools.partial(_fused_defense_kernel, C=C, H=H, W=W)

    flops = N * (9 * 2 * C * C * HW + 2 * C * HW * P + 6 * C * HW)
    bytes_accessed = 4 * (N * C * HWp + 9 * C * C + C + C * HW * P + P + N * P)

    grid_spec = pltpu.PrefetchScalarGridSpec(
        num_scalar_prefetch=0,
        grid=(N,),
        in_specs=[
            pl.BlockSpec((1, C, HWp), lambda n: (n, 0, 0)),   # padded image
            pl.BlockSpec((9, C, C), lambda n: (0, 0, 0)),     # conv weights
            pl.BlockSpec((C, 1), lambda n: (0, 0)),           # conv bias
            pl.BlockSpec((C * HW, P), lambda n: (0, 0)),      # linear weights
            pl.BlockSpec((1, P), lambda n: (0, 0)),           # linear bias
        ],
        out_specs=pl.BlockSpec((1, 1, P), lambda n: (n, 0, 0)),
    )
    return pl.pallas_call(
        kernel,
        out_shape=jax.ShapeDtypeStruct((N, 1, P), jnp.float32),
        grid_spec=grid_spec,
        compiler_params=pltpu.CompilerParams(
            dimension_semantics=("parallel",),
            vmem_limit_bytes=32 * 1024 * 1024,
        ),
        cost_estimate=pl.CostEstimate(
            flops=flops, transcendentals=0, bytes_accessed=bytes_accessed),
    )


@functools.partial(jax.jit, static_argnames=("n_classes",))
def purification_defense_forward(x, w_p, b_p, w_c_pad, b_c_pad, n_classes):
    N, C, H, W = x.shape
    P = w_c_pad.shape[1]
    # Cheap layout plumbing only (no 9x im2col): flatten spatial + zero halo.
    x_flat = x.reshape(N, C, H * W).astype(jnp.float32)
    x_halo = jnp.pad(x_flat, ((0, 0), (0, 0), (W + 1, W + 1)))
    fused = _build_fused_call(N, C, H, W, P)
    logits_pad = fused(x_halo, w_p, b_p, w_c_pad, b_c_pad)    # [N, 1, P]
    return logits_pad.reshape(N, P)[:, :n_classes]


class PurificationDefense:
    """JAX/Pallas port of the PyTorch PurificationDefense wrapper.

    forward(x) = classifier(purifier(x)); both stages run inside a single
    fused Pallas TPU kernel.
    """
    # TODO(synk): the PyTorch module wraps two opaque callables (and torch
    # device/eval()/requires_grad_ bookkeeping); here they are instantiated as
    # a synthetic 3x3 residual-conv denoiser and a linear head, inference-only.

    def __init__(self, n_channels=4, spatial=16, n_classes=10,
                 key=jax.random.PRNGKey(42)):
        self.C = n_channels
        self.H = self.W = spatial
        self.n_classes = n_classes
        self.P = _round_up(n_classes, _LANES)

        k1, k2, k3, k4 = jax.random.split(key, 4)
        # purifier: 3x3 conv weights [tap, C_out, C_in], tap index = dh*3 + dw
        self.w_p = jax.random.normal(
            k1, (9, n_channels, n_channels), jnp.float32) * 0.05
        self.b_p = jax.random.normal(k2, (n_channels, 1), jnp.float32) * 0.01
        # classifier: linear over NCHW-flattened purified image, lane-padded
        feat = n_channels * spatial * spatial
        w_c = jax.random.normal(k3, (feat, n_classes), jnp.float32) * 0.02
        b_c = jax.random.normal(k4, (1, n_classes), jnp.float32) * 0.01
        self.w_c = jnp.pad(w_c, ((0, 0), (0, self.P - n_classes)))
        self.b_c = jnp.pad(b_c, ((0, 0), (0, self.P - n_classes)))

    def __call__(self, x):
        return purification_defense_forward(
            x, self.w_p, self.b_p, self.w_c, self.b_c,
            n_classes=self.n_classes)

    def reference(self, x):
        """Pure-JAX forward with identical parameters (validation only)."""
        N, C, H, W = x.shape
        xp = jnp.pad(x, ((0, 0), (0, 0), (1, 1), (1, 1)))
        acc = jnp.zeros_like(x)
        for dh in range(3):
            for dw in range(3):
                tap = xp[:, :, dh:dh + H, dw:dw + W]
                acc = acc + jnp.einsum('oc,nchw->nohw',
                                       self.w_p[dh * 3 + dw], tap)
        purified = jnp.clip(acc + self.b_p.reshape(1, C, 1, 1) + x, 0.0, 1.0)
        logits = purified.reshape(N, -1) @ self.w_c + self.b_c
        return logits[:, :self.n_classes]


if __name__ == "__main__":
    N, C, H, W = 2, 4, 16, 16
    x = jax.random.uniform(jax.random.PRNGKey(0), (N, C, H, W), jnp.float32)

    defense = PurificationDefense(n_channels=C, spatial=H, n_classes=10,
                                  key=jax.random.PRNGKey(42))
    logits = jax.block_until_ready(defense(x))

    assert logits.shape == (N, 10), logits.shape
    assert logits.dtype == jnp.float32
    assert bool(jnp.all(jnp.isfinite(logits)))

    ref = defense.reference(x)
    max_err = float(jnp.max(jnp.abs(logits - ref)))
    assert max_err < 2e-2, f"mismatch vs pure-JAX reference: {max_err}"

    print("KERNEL_OK")
</pallas_src>

<mosaic_0001>
module attributes {stable_mosaic.version = 11 : i64} {
  func.func @_fused_defense_kernel(%arg0: i32, %arg1: memref<1x4x290xf32, #tpu.memory_space<vmem>>, %arg2: memref<9x4x4xf32, #tpu.memory_space<vmem>>, %arg3: memref<4x1xf32, #tpu.memory_space<vmem>>, %arg4: memref<1024x128xf32, #tpu.memory_space<vmem>>, %arg5: memref<1x128xf32, #tpu.memory_space<vmem>>, %arg6: memref<1x1x128xf32, #tpu.memory_space<vmem>>) attributes {dimension_semantics = [#tpu.dimension_semantics<parallel>], iteration_bounds = array<i64: 2>, scalar_prefetch = 0 : i64, scratch_operands = 0 : i64, tpu.core_type = #tpu.core_type<tc>, window_params = [{transform_indices = @transform_0, window_bounds = array<i64: 1, 4, 290>}, {pipeline_mode = #tpu.pipeline_mode<synchronous>, transform_indices = @transform_1, window_bounds = array<i64: 9, 4, 4>}, {pipeline_mode = #tpu.pipeline_mode<synchronous>, transform_indices = @transform_2, window_bounds = array<i64: 4, 1>}, {pipeline_mode = #tpu.pipeline_mode<synchronous>, transform_indices = @transform_3, window_bounds = array<i64: 1024, 128>}, {pipeline_mode = #tpu.pipeline_mode<synchronous>, transform_indices = @transform_4, window_bounds = array<i64: 1, 128>}, {transform_indices = @transform_5, window_bounds = array<i64: 1, 1, 128>}]} {
    %c0 = arith.constant 0 : index
    %c0_0 = arith.constant 0 : index
    %c0_1 = arith.constant 0 : index
    %0 = vector.load %arg1[%c0, %c0_0, %c0_1] : memref<1x4x290xf32, #tpu.memory_space<vmem>>, vector<1x4x290xf32>
    %1 = vector.shape_cast %0 : vector<1x4x290xf32> to vector<4x290xf32>
    %2 = tpu.iota {dimensions = array<i32: 1>} : vector<4x290xi32>
    %c17_i32 = arith.constant 17 : i32
    %3 = vector.broadcast %c17_i32 : i32 to vector<4x290xi32>
    %4 = arith.subi %2, %3 : vector<4x290xi32>
    %c15_i32 = arith.constant 15 : i32
    %5 = vector.broadcast %c15_i32 : i32 to vector<4x290xi32>
    %6 = arith.andi %4, %5 : vector<4x290xi32>
    %c15_i32_2 = arith.constant 15 : i32
    %7 = vector.broadcast %c15_i32_2 : i32 to vector<4x290xi32>
    %8 = arith.cmpi ne, %6, %7 : vector<4x290xi32>
    %cst = arith.constant 0.000000e+00 : f32
    %9 = vector.broadcast %cst : f32 to vector<4x290xf32>
    %10 = arith.select %8, %1, %9 : vector<4x290xi1>, vector<4x290xf32>
    %c0_i32 = arith.constant 0 : i32
    %11 = vector.broadcast %c0_i32 : i32 to vector<4x290xi32>
    %12 = arith.cmpi ne, %6, %11 : vector<4x290xi32>
    %cst_3 = arith.constant 0.000000e+00 : f32
    %13 = vector.broadcast %cst_3 : f32 to vector<4x290xf32>
    %14 = arith.select %12, %1, %13 : vector<4x290xi1>, vector<4x290xf32>
    %cst_4 = arith.constant 0.000000e+00 : f32
    %15 = vector.broadcast %cst_4 : f32 to vector<4x256xf32>
    %16 = vector.extract_strided_slice %10 {offsets = [0, 0], sizes = [4, 256], strides = [1, 1]} : vector<4x290xf32> to vector<4x256xf32>
    %c0_5 = arith.constant 0 : index
    %c0_6 = arith.constant 0 : index
    %c0_7 = arith.constant 0 : index
    %17 = vector.load %arg2[%c0_5, %c0_6, %c0_7] : memref<9x4x4xf32, #tpu.memory_space<vmem>>, vector<1x4x4xf32>
    %18 = vector.shape_cast %17 : vector<1x4x4xf32> to vector<4x4xf32>
    %cst_8 = arith.constant dense<0.000000e+00> : vector<4x256xf32>
    %19 = tpu.matmul %18, %16, %cst_8 {dimension_numbers = #tpu.dot_dimension_numbers<[1], [0], [0], [1], [0, 0, 1, 1], [], []>} : vector<4x4xf32>, vector<4x256xf32>, vector<4x256xf32> -> vector<4x256xf32>
    %20 = arith.addf %15, %19 : vector<4x256xf32>
    %21 = vector.extract_strided_slice %1 {offsets = [0, 1], sizes = [4, 256], strides = [1, 1]} : vector<4x290xf32> to vector<4x256xf32>
    %c1 = arith.constant 1 : index
    %c0_9 = arith.constant 0 : index
    %c0_10 = arith.constant 0 : index
    %22 = vector.load %arg2[%c1, %c0_9, %c0_10] : memref<9x4x4xf32, #tpu.memory_space<vmem>>, vector<1x4x4xf32>
    %23 = vector.shape_cast %22 : vector<1x4x4xf32> to vector<4x4xf32>
    %cst_11 = arith.constant dense<0.000000e+00> : vector<4x256xf32>
    %24 = tpu.matmul %23, %21, %cst_11 {dimension_numbers = #tpu.dot_dimension_numbers<[1], [0], [0], [1], [0, 0, 1, 1], [], []>} : vector<4x4xf32>, vector<4x256xf32>, vector<4x256xf32> -> vector<4x256xf32>
    %25 = arith.addf %20, %24 : vector<4x256xf32>
    %26 = vector.extract_strided_slice %14 {offsets = [0, 2], sizes = [4, 256], strides = [1, 1]} : vector<4x290xf32> to vector<4x256xf32>
    %c2 = arith.constant 2 : index
    %c0_12 = arith.constant 0 : index
    %c0_13 = arith.constant 0 : index
    %27 = vector.load %arg2[%c2, %c0_12, %c0_13] : memref<9x4x4xf32, #tpu.memory_space<vmem>>, vector<1x4x4xf32>
    %28 = vector.shape_cast %27 : vector<1x4x4xf32> to vector<4x4xf32>
    %cst_14 = arith.constant dense<0.000000e+00> : vector<4x256xf32>
    %29 = tpu.matmul %28, %26, %cst_14 {dimension_numbers = #tpu.dot_dimension_numbers<[1], [0], [0], [1], [0, 0, 1, 1], [], []>} : vector<4x4xf32>, vector<4x256xf32>, vector<4x256xf32> -> vector<4x256xf32>
    %30 = arith.addf %25, %29 : vector<4x256xf32>
    %31 = vector.extract_strided_slice %10 {offsets = [0, 16], sizes = [4, 256], strides = [1, 1]} : vector<4x290xf32> to vector<4x256xf32>
    %c3 = arith.constant 3 : index
    %c0_15 = arith.constant 0 : index
    %c0_16 = arith.constant 0 : index
    %32 = vector.load %arg2[%c3, %c0_15, %c0_16] : memref<9x4x4xf32, #tpu.memory_space<vmem>>, vector<1x4x4xf32>
    %33 = vector.shape_cast %32 : vector<1x4x4xf32> to vector<4x4xf32>
    %cst_17 = arith.constant dense<0.000000e+00> : vector<4x256xf32>
    %34 = tpu.matmul %33, %31, %cst_17 {dimension_numbers = #tpu.dot_dimension_numbers<[1], [0], [0], [1], [0, 0, 1, 1], [], []>} : vector<4x4xf32>, vector<4x256xf32>, vector<4x256xf32> -> vector<4x256xf32>
    %35 = arith.addf %30, %34 : vector<4x256xf32>
    %36 = vector.extract_strided_slice %1 {offsets = [0, 17], sizes = [4, 256], strides = [1, 1]} : vector<4x290xf32> to vector<4x256xf32>
    %c4 = arith.constant 4 : index
    %c0_18 = arith.constant 0 : index
    %c0_19 = arith.constant 0 : index
    %37 = vector.load %arg2[%c4, %c0_18, %c0_19] : memref<9x4x4xf32, #tpu.memory_space<vmem>>, vector<1x4x4xf32>
    %38 = vector.shape_cast %37 : vector<1x4x4xf32> to vector<4x4xf32>
    %cst_20 = arith.constant dense<0.000000e+00> : vector<4x256xf32>
    %39 = tpu.matmul %38, %36, %cst_20 {dimension_numbers = #tpu.dot_dimension_numbers<[1], [0], [0], [1], [0, 0, 1, 1], [], []>} : vector<4x4xf32>, vector<4x256xf32>, vector<4x256xf32> -> vector<4x256xf32>
    %40 = arith.addf %35, %39 : vector<4x256xf32>
    %41 = vector.extract_strided_slice %14 {offsets = [0, 18], sizes = [4, 256], strides = [1, 1]} : vector<4x290xf32> to vector<4x256xf32>
    %c5 = arith.constant 5 : index
    %c0_21 = arith.constant 0 : index
    %c0_22 = arith.constant 0 : index
    %42 = vector.load %arg2[%c5, %c0_21, %c0_22] : memref<9x4x4xf32, #tpu.memory_space<vmem>>, vector<1x4x4xf32>
    %43 = vector.shape_cast %42 : vector<1x4x4xf32> to vector<4x4xf32>
    %cst_23 = arith.constant dense<0.000000e+00> : vector<4x256xf32>
    %44 = tpu.matmul %43, %41, %cst_23 {dimension_numbers = #tpu.dot_dimension_numbers<[1], [0], [0], [1], [0, 0, 1, 1], [], []>} : vector<4x4xf32>, vector<4x256xf32>, vector<4x256xf32> -> vector<4x256xf32>
    %45 = arith.addf %40, %44 : vector<4x256xf32>
    %46 = vector.extract_strided_slice %10 {offsets = [0, 32], sizes = [4, 256], strides = [1, 1]} : vector<4x290xf32> to vector<4x256xf32>
    %c6 = arith.constant 6 : index
    %c0_24 = arith.constant 0 : index
    %c0_25 = arith.constant 0 : index
    %47 = vector.load %arg2[%c6, %c0_24, %c0_25] : memref<9x4x4xf32, #tpu.memory_space<vmem>>, vector<1x4x4xf32>
    %48 = vector.shape_cast %47 : vector<1x4x4xf32> to vector<4x4xf32>
    %cst_26 = arith.constant dense<0.000000e+00> : vector<4x256xf32>
    %49 = tpu.matmul %48, %46, %cst_26 {dimension_numbers = #tpu.dot_dimension_numbers<[1], [0], [0], [1], [0, 0, 1, 1], [], []>} : vector<4x4xf32>, vector<4x256xf32>, vector<4x256xf32> -> vector<4x256xf32>
    %50 = arith.addf %45, %49 : vector<4x256xf32>
    %51 = vector.extract_strided_slice %1 {offsets = [0, 33], sizes = [4, 256], strides = [1, 1]} : vector<4x290xf32> to vector<4x256xf32>
    %c7 = arith.constant 7 : index
    %c0_27 = arith.constant 0 : index
    %c0_28 = arith.constant 0 : index
    %52 = vector.load %arg2[%c7, %c0_27, %c0_28] : memref<9x4x4xf32, #tpu.memory_space<vmem>>, vector<1x4x4xf32>
    %53 = vector.shape_cast %52 : vector<1x4x4xf32> to vector<4x4xf32>
    %cst_29 = arith.constant dense<0.000000e+00> : vector<4x256xf32>
    %54 = tpu.matmul %53, %51, %cst_29 {dimension_numbers = #tpu.dot_dimension_numbers<[1], [0], [0], [1], [0, 0, 1, 1], [], []>} : vector<4x4xf32>, vector<4x256xf32>, vector<4x256xf32> -> vector<4x256xf32>
    %55 = arith.addf %50, %54 : vector<4x256xf32>
    %56 = vector.extract_strided_slice %14 {offsets = [0, 34], sizes = [4, 256], strides = [1, 1]} : vector<4x290xf32> to vector<4x256xf32>
    %c8 = arith.constant 8 : index
    %c0_30 = arith.constant 0 : index
    %c0_31 = arith.constant 0 : index
    %57 = vector.load %arg2[%c8, %c0_30, %c0_31] : memref<9x4x4xf32, #tpu.memory_space<vmem>>, vector<1x4x4xf32>
    %58 = vector.shape_cast %57 : vector<1x4x4xf32> to vector<4x4xf32>
    %cst_32 = arith.constant dense<0.000000e+00> : vector<4x256xf32>
    %59 = tpu.matmul %58, %56, %cst_32 {dimension_numbers = #tpu.dot_dimension_numbers<[1], [0], [0], [1], [0, 0, 1, 1], [], []>} : vector<4x4xf32>, vector<4x256xf32>, vector<4x256xf32> -> vector<4x256xf32>
    %60 = arith.addf %55, %59 : vector<4x256xf32>
    %61 = vector.extract_strided_slice %1 {offsets = [0, 17], sizes = [4, 256], strides = [1, 1]} : vector<4x290xf32> to vector<4x256xf32>
    %c0_33 = arith.constant 0 : index
    %c0_34 = arith.constant 0 : index
    %62 = vector.load %arg3[%c0_33, %c0_34] : memref<4x1xf32, #tpu.memory_space<vmem>>, vector<4x1xf32>
    %63 = vector.broadcast %62 : vector<4x1xf32> to vector<4x256xf32>
    %64 = arith.addf %60, %63 : vector<4x256xf32>
    %65 = arith.addf %64, %61 : vector<4x256xf32>
    %cst_35 = arith.constant 0.000000e+00 : f32
    %cst_36 = arith.constant 1.000000e+00 : f32
    %66 = vector.broadcast %cst_35 : f32 to vector<4x256xf32>
    %67 = arith.maximumf %66, %65 : vector<4x256xf32>
    %68 = vector.broadcast %cst_36 : f32 to vector<4x256xf32>
    %69 = arith.minimumf %68, %67 : vector<4x256xf32>
    %c0_37 = arith.constant 0 : index
    %c0_38 = arith.constant 0 : index
    %70 = vector.load %arg5[%c0_37, %c0_38] : memref<1x128xf32, #tpu.memory_space<vmem>>, vector<1x128xf32>
    %71 = vector.extract_strided_slice %69 {offsets = [0, 0], sizes = [1, 256], strides = [1, 1]} : vector<4x256xf32> to vector<1x256xf32>
    %c0_39 = arith.constant 0 : index
    %c0_40 = arith.constant 0 : index
    %72 = vector.load %arg4[%c0_39, %c0_40] : memref<1024x128xf32, #tpu.memory_space<vmem>>, vector<256x128xf32>
    %cst_41 = arith.constant dense<0.000000e+00> : vector<1x128xf32>
    %73 = tpu.matmul %71, %72, %cst_41 {dimension_numbers = #tpu.dot_dimension_numbers<[1], [0], [0], [1], [0, 0, 1, 1], [], []>} : vector<1x256xf32>, vector<256x128xf32>, vector<1x128xf32> -> vector<1x128xf32>
    %74 = arith.addf %70, %73 : vector<1x128xf32>
    %75 = vector.extract_strided_slice %69 {offsets = [1, 0], sizes = [1, 256], strides = [1, 1]} : vector<4x256xf32> to vector<1x256xf32>
    %c256 = arith.constant 256 : index
    %c0_42 = arith.constant 0 : index
    %76 = vector.load %arg4[%c256, %c0_42] : memref<1024x128xf32, #tpu.memory_space<vmem>>, vector<256x128xf32>
    %cst_43 = arith.constant dense<0.000000e+00> : vector<1x128xf32>
    %77 = tpu.matmul %75, %76, %cst_43 {dimension_numbers = #tpu.dot_dimension_numbers<[1], [0], [0], [1], [0, 0, 1, 1], [], []>} : vector<1x256xf32>, vector<256x128xf32>, vector<1x128xf32> -> vector<1x128xf32>
    %78 = arith.addf %74, %77 : vector<1x128xf32>
    %79 = vector.extract_strided_slice %69 {offsets = [2, 0], sizes = [1, 256], strides = [1, 1]} : vector<4x256xf32> to vector<1x256xf32>
    %c512 = arith.constant 512 : index
    %c0_44 = arith.constant 0 : index
    %80 = vector.load %arg4[%c512, %c0_44] : memref<1024x128xf32, #tpu.memory_space<vmem>>, vector<256x128xf32>
    %cst_45 = arith.constant dense<0.000000e+00> : vector<1x128xf32>
    %81 = tpu.matmul %79, %80, %cst_45 {dimension_numbers = #tpu.dot_dimension_numbers<[1], [0], [0], [1], [0, 0, 1, 1], [], []>} : vector<1x256xf32>, vector<256x128xf32>, vector<1x128xf32> -> vector<1x128xf32>
    %82 = arith.addf %78, %81 : vector<1x128xf32>
    %83 = vector.extract_strided_slice %69 {offsets = [3, 0], sizes = [1, 256], strides = [1, 1]} : vector<4x256xf32> to vector<1x256xf32>
    %c768 = arith.constant 768 : index
    %c0_46 = arith.constant 0 : index
    %84 = vector.load %arg4[%c768, %c0_46] : memref<1024x128xf32, #tpu.memory_space<vmem>>, vector<256x128xf32>
    %cst_47 = arith.constant dense<0.000000e+00> : vector<1x128xf32>
    %85 = tpu.matmul %83, %84, %cst_47 {dimension_numbers = #tpu.dot_dimension_numbers<[1], [0], [0], [1], [0, 0, 1, 1], [], []>} : vector<1x256xf32>, vector<256x128xf32>, vector<1x128xf32> -> vector<1x128xf32>
    %86 = arith.addf %82, %85 : vector<1x128xf32>
    %c0_48 = arith.constant 0 : index
    %c0_49 = arith.constant 0 : index
    %c0_50 = arith.constant 0 : index
    %87 = vector.load %arg6[%c0_48, %c0_49, %c0_50] : memref<1x1x128xf32, #tpu.memory_space<vmem>>, vector<1x1x128xf32>
    %88 = vector.shape_cast %87 : vector<1x1x128xf32> to vector<1x128xf32>
    %89 = vector.shape_cast %86 : vector<1x128xf32> to vector<1x1x128xf32>
    tpu.vector_store %arg6[%c0_48, %c0_49, %c0_50], %89 {strides = array<i32>} : memref<1x1x128xf32, #tpu.memory_space<vmem>>, vector<1x1x128xf32>,
    return
  }
  func.func @transform_0(%arg0: i32) -> (i32, i32, i32) {
    %c0_i32 = arith.constant 0 : i32
    %c0_i32_0 = arith.constant 0 : i32
    %c0_i32_1 = arith.constant 0 : i32
    return %arg0, %c0_i32, %c0_i32_0 : i32, i32, i32
  }
  func.func @transform_1(%arg0: i32) -> (i32, i32, i32) {
    %c0_i32 = arith.constant 0 : i32
    %c0_i32_0 = arith.constant 0 : i32
    %c0_i32_1 = arith.constant 0 : i32
    %c0_i32_2 = arith.constant 0 : i32
    return %c0_i32, %c0_i32_0, %c0_i32_1 : i32, i32, i32
  }
  func.func @transform_2(%arg0: i32) -> (i32, i32) {
    %c0_i32 = arith.constant 0 : i32
    %c0_i32_0 = arith.constant 0 : i32
    %c0_i32_1 = arith.constant 0 : i32
    return %c0_i32, %c0_i32_0 : i32, i32
  }
  func.func @transform_3(%arg0: i32) -> (i32, i32) {
    %c0_i32 = arith.constant 0 : i32
    %c0_i32_0 = arith.constant 0 : i32
    %c0_i32_1 = arith.constant 0 : i32
    return %c0_i32, %c0_i32_0 : i32, i32
  }
  func.func @transform_4(%arg0: i32) -> (i32, i32) {
    %c0_i32 = arith.constant 0 : i32
    %c0_i32_0 = arith.constant 0 : i32
    %c0_i32_1 = arith.constant 0 : i32
    return %c0_i32, %c0_i32_0 : i32, i32
  }
  func.func @transform_5(%arg0: i32) -> (i32, i32, i32) {
    %c0_i32 = arith.constant 0 : i32
    %c0_i32_0 = arith.constant 0 : i32
    %c0_i32_1 = arith.constant 0 : i32
    return %arg0, %c0_i32, %c0_i32_0 : i32, i32, i32
  }
}

</mosaic_0001>

<bundles_post_ra>
// kernel: purification_defense_forward.1
= control target key start
LH: loop header
LB: loop body
LE: loop exit
PB: predicated region body
PF: predicated region fallthrough
CT: control target
= control target key end

     0   :  { %10 = vsyncpa [#allocation3], 0  ;;  %s2373_s0 = inlined_call_operand.vmem [shape: f32[2,4,290], index: 0, kind: input, shape index: {}]   ;;  %s2374_s1 = inlined_call_operand.vmem [shape: f32[9,4,4], index: 1, kind: input, shape index: {}]   ;;  %s2375_s2 = inlined_call_operand.vmem [shape: f32[4,1], index: 2, kind: input, shape index: {}]   ;;  %s2376_s3 = inlined_call_operand.hbm [shape: f32[1024,128], index: 3, kind: input, shape index: {}]   ;;  %s2377_s4 = inlined_call_operand.vmem [shape: f32[1,128], index: 4, kind: input, shape index: {}]   ;;  %s2378_s5 = inlined_call_operand.hbm [shape: f32[2,1,128], index: 5, kind: output, shape index: {}]  }
   0x1   :  { %11 = vsyncpa [#allocation4], 0 }
   0x2   :  { %13 = vsyncpa [#allocation4 + $0x1], 0  ;;  %s2139_s18 = smov 0   ;;  %s2141_s19 = smov 0  }
   0x3   :  { %s2143_s20 = smov 0   ;;  %s2145_s21 = smov 0  }
   0x4 LB: > { %s2160_s22 = sadd.s32 4294967295, %s2093_s21   ;;  %s1602_s23 = sadd.s32 4294967294, %s2093_s21   ;;  %s2093_s21 = sphi %s2145_s21, %s2394_s21   ;;  %s2089_s20 = sphi %s2143_s20, %s2393_s20   ;;  %s2085_s19 = sphi %s2141_s19, %s2392_s19   ;;  %s2081_s18 = sphi %s2139_s18, %s2391_s18  }
   0x5   : > { %s2164_s24 = sadd.s32 1, %s2093_s21   ;;  %s136_s25 = sadd.s32 1, %s2089_s20 }
   0x6   : > { %s133_s26 = ssub.s32 %s2093_s21, %s2164_s24  ;;  %p146_p0 = scmp.ne.s32.totalorder %s2089_s20, %s2085_s19 }
   0x7   : > { %p134_p1 = scmp.eq.s32.totalorder %s133_s26, 0  ;;  %p147_p2 = scmp.eq.s32.totalorder %s2160_s22, 1 }
   0x8   : > { %p152_p3 = scmp.ne.s32.totalorder %s2085_s19, %s2081_s18  ;;  %p153_p4 = scmp.eq.s32.totalorder %s1602_s23, 1 }
   0x9   : > { %s2175_s27 = scalar_select %p134_p1, %s2089_s20, %s136_s25  }
   0xa   : > { %p2177_p5 = por %p147_p2, %p146_p0  ;;  %p2181_p6 = por %p153_p4, %p152_p3 }
   0xb   : > { %p1603_p7 = scmp.ge.s32.totalorder %s2093_s21, 1  ;;  %p160_p8 = scmp.lt.s32.totalorder %s2093_s21, 3 }
   0xc   : > { %s2382_s28 = scalar_select %p2177_p5, 1, 0 }
   0xd   : > { %s2383_s29 = scalar_select %p2181_p6, 1, 0 }
   0xe   : > { %p2379_p9 = scmp.eq.s32.totalorder %s2160_s22, 0  ;;  %p2188_p10 = pnand %p1603_p7, %p160_p8 }
   0xf   : > { %s2095_s6 = smov [#allocation2]   ;;  %s1999_s11 = scalar_lea.hbm %s2376_s3, 16384 }
  0x10   : > { %s2384_s30 = scalar_select %p2188_p10, 1, 0 }
  0x11   : > { %s178_s7 = sshll.u32 %s2095_s6, 4  ;;  %p1941_p11 = pneg %p2188_p10  ;;  %s179_s7 = int_to_ptr.vmem [resolvable:$true] %s178_s7 }
  0x12   : > { %p2000_p13 = scmp.ne.s32.totalorder %s2376_s3, %s1999_s11  ;;  %p2006_p3 = scmp.lt.u32.totalorder %s1999_s11, %s2376_s3 }
  0x13   : > { %p2196_p12 = pnand %p2379_p9, %p1941_p11 }
  0x15   : > { %p2001_p0 = pneg %p2196_p12 }
  0x17   : > { %p2002_p1 = pnand %p2001_p0, %p2000_p13 }
  0x19   : > { %p2003_p2 = pneg %p2002_p1 }
  0x1b   : > { %p2008_p4 = pnand %p2006_p3, %p2003_p2 }
  0x1d   : > { %2011 = shalt.err (!%p2008_p4)
}
  0x1e   : > { %s2012_s16 = scalar_lea.vmem %s179_s7, 16384  ;;  %p2020_p9 = scmp.lt.s32.totalorder %s179_s7, %s179_s7 }
  0x1f   : > { %p2013_p7 = scmp.ne.s32.totalorder %s179_s7, %s2012_s16  ;;  %p2021_p6 = scmp.lt.s32.totalorder %s2012_s16, %s2012_s16 }
  0x21   : > { %p2015_p8 = pnand %p2013_p7, %p2001_p0  ;;  %p2022_p5 = por %p2021_p6, %p2020_p9 }
  0x23   : > { %p2016_p11 = pneg %p2015_p8 }
  0x25   : > { %p2023_p10 = pnand %p2022_p5, %p2016_p11 }
  0x27   : > { %2026 = shalt.err (!%p2023_p10)
}
  0x28   : > { %s2096_s17 = smov 128   ;;  %s2097_s23 = smov 8  }
  0x29   : > { %1944 = dma.hbm_to_vmem [thread:$0]  (!%p2196_p12), %s2376_s3, 16384, %s179_s7, [#allocation3], %s2096_s17, %s2096_s17, %s2097_s23  }
  0x2a   : > { %p2386_p13 = scmp.ne.s32.totalorder %s2384_s30, 0 }
  0x2b   : > { %p2387_p1 = scmp.eq.s32.totalorder (!%p2386_p13), %s2160_s22, 0 }
  0x2c   : > { %205 = sbr.rel (%p2386_p13) target bundleno = 765 (0x2fd), region = 40 }
  0x33   : > { %2072 = dma.done.wait (%p2387_p1), [#allocation3], 16384   ;;  %p2388_p0 = pmov %p2387_p1 }
  0x34   : > { %p232_p5 = scmp.lt.s32.totalorder %s2160_s22, 1  ;;  %v239_v0 = vlaneseq  ;;  %v2098_v2 = vmov 0.0   ;;  %s2099_s10 = smov 127   ;;  %v1078_v20 = vld [vmem:[%s2375_s2] sm:$0xf]  ;;  %v1112_v22 = vld [vmem:[#allocation2 + $0x88] sm:$0xff] }
  0x35   : > { %2074 = vsyncadd (%p2388_p0), [#allocation3], 4294950912  ;;  %350 = vmatprep.mubr.f32.mxu0 %v2098_v2  ;;  %s2100_s11 = smov 126   ;;  %s2101_s12 = smov 112   ;;  %v1111_v21 = vld [vmem:[#allocation2 + $0x80] sm:$0xff]  ;;  %v2107_v23 = vmov 0  }
  0x36   : > { %s233_s6 = scalar_select %p232_p5, %s2160_s22, 1  ;;  %v240_v1 = vand.u32 127, %v239_v0  ;;  %1997 = vset.pattern.permute.xlu0 %v2107_v23  ;;  %v1790_v24 = vpack.c.bf16 %v1112_v22, %v1111_v21  ;;  %v1095_v25 = vld [vmem:[#allocation2] sm:$0xff]  ;;  %v1096_v26 = vld [vmem:[#allocation2 + $0x8] sm:$0xff]  ;;  %v1113_v28 = vld [vmem:[#allocation2 + $0x90] sm:$0xff]  ;;  %vm274_vm6 = vcmask 1039360  }
  0x37   : > { %s2102_s13 = smov 111   ;;  %s2103_s14 = smov 110   ;;  %v1792_v27 = vpack.c.bf16 %v1096_v26, %v1095_v25  ;;  %v1114_v29 = vld [vmem:[#allocation2 + $0x98] sm:$0xff]  ;;  %v1097_v31 = vld [vmem:[#allocation2 + $0x10] sm:$0xff]  ;;  %v1115_v34 = vld [vmem:[#allocation2 + $0xa0] sm:$0xff]  ;;  %vm281_vm7 = vcmask 1043456  }
  0x38   : > { %s1934_s8 = smul.u32 12, %s233_s6  ;;  %v241_v3 = vadd.s32 128, %v240_v1  ;;  %v242_v4 = vadd.s32 256, %v240_v1  ;;  %v1609_v5 = vadd.s32 4294967279, %v240_v1  ;;  %s2104_s15 = smov 96   ;;  %1791 = vmatprep.subr.bf16.mxu1 %v1790_v24  ;;  %v1794_v30 = vpack.c.bf16 %v1114_v29, %v1113_v28  ;;  %v1098_v32 = vld [vmem:[#allocation2 + $0x18] sm:$0xff] }
  0x39   : > { %s2105_s16 = smov 95   ;;  %s2106_s17 = smov 94   ;;  %1793 = vmatpush3.bf16.msra.mxu1 %v1792_v27  ;;  %v1796_v33 = vpack.c.bf16 %v1098_v32, %v1097_v31  ;;  %v1116_v35 = vld [vmem:[#allocation2 + $0xa8] sm:$0xff]  ;;  %v1099_v37 = vld [vmem:[#allocation2 + $0x20] sm:$0xff]  ;;  %v1117_v39 = vld [vmem:[#allocation2 + $0xb0] sm:$0xff]  ;;  %vm277_vm8 = vcmask 31744  }
  0x3a   : > { %s236_s9 = scalar_lea.vmem %s2373_s0, %s1934_s8  ;;  %v1610_v6 = vadd.s32 4294967279, %v241_v3  ;;  %v1611_v7 = vadd.s32 4294967279, %v242_v4  ;;  %v246_v8 = vand.u32 15, %v1609_v5  ;;  %1795 = vmatprep.subr.bf16.mxu1 %v1794_v30  ;;  %v1798_v36 = vpack.c.bf16 %v1116_v35, %v1115_v34  ;;  %v1100_v38 = vld [vmem:[#allocation2 + $0x28] sm:$0xff]  ;;  %v1118_v41 = vld [vmem:[#allocation2 + $0xb8] sm:$0xff]  ;;  %v1101_v43 = vld [vmem:[#allocation2 + $0x30] sm:$0xff] }
  0x3b   : > { %v237_v9 = vld [vmem:[%s236_s9] sm:$0xff]  ;;  %v238_v13 = vld [vmem:[%s236_s9 + $0x8] sm:$0xf]  ;;  %v1800_v40 = vpack.c.bf16 %v1100_v38, %v1099_v37  ;;  %v1802_v42 = vpack.c.bf16 %v1118_v41, %v1117_v39  ;;  %v1102_v44 = vld [vmem:[#allocation2 + $0x38] sm:$0xff]  ;;  %vm448_vm9 = vcmask 1031168   ;;  %vm540_vm10 = vcmask 916480  }
  0x3c   : > { %268 = vrot.lane.b32.xlu1 %v237_v9, %s2099_s10  ;;  %v254_v10 = vcombine.high %v237_v9, %v237_v9  ;;  %v247_v11 = vand.u32 15, %v1610_v6  ;;  %v248_v12 = vand.u32 15, %v1611_v7  ;;  %vm259_vm1 = vcmp.ne.s32.totalorder %v246_v8, 0  ;;  %v1119_v45 = vld [vmem:[#allocation2 + $0xc0] sm:$0xff]  ;;  %v1120_v46 = vld [vmem:[#allocation2 + $0xc8] sm:$0xff]  ;;  %v1121_v51 = vld [vmem:[#allocation2 + $0xd0] sm:$0xff] }
  0x3d   : > { %v262_v15 = vsel %vm259_vm1, %v237_v9, 0.0  ;;  %vm249_vm5 = vcmp.ne.s32.totalorder %v246_v8, 15  ;;  %1797 = vmatpush3.bf16.msra.mxu1 %v1796_v33  ;;  %v1804_v47 = vpack.c.bf16 %v1102_v44, %v1101_v43  ;;  %v1806_v48 = vpack.c.bf16 %v1120_v46, %v1119_v45  ;;  %v1103_v49 = vld [vmem:[#allocation2 + $0x40] sm:$0xff]  ;;  %v1104_v50 = vld [vmem:[#allocation2 + $0x48] sm:$0xff]  ;;  %v1122_v52 = vld [vmem:[#allocation2 + $0xd8] sm:$0xff]  ;;  %s230_s7 = sand.u32 1, %s2085_s19  }
  0x3e   : > { %270 = vrot.lane.b32.xlu0 %v254_v10, %s2099_s10  ;;  %vm260_vm0 = vcmp.ne.s32.totalorder %v247_v11, 0  ;;  %vm261_vm2 = vcmp.ne.s32.totalorder %v248_v12, 0  ;;  %vm251_vm3 = vcmp.ne.s32.totalorder %v248_v12, 15  ;;  %vm250_vm4 = vcmp.ne.s32.totalorder %v247_v11, 15  ;;  %1799 = vmatprep.subr.bf16.mxu1 %v1798_v36  ;;  %v1105_v55 = vld [vmem:[#allocation2 + $0x50] sm:$0xff]  ;;  %v1106_v56 = vld [vmem:[#allocation2 + $0x58] sm:$0xff] }
  0x3f   : > { %v263_v14 = vsel %vm260_vm0, %v254_v10, 0.0  ;;  %v264_v16 = vsel %vm261_vm2, %v238_v13, 0.0  ;;  %v258_v17 = vsel %vm251_vm3, %v238_v13, 0.0  ;;  %v2228_v18 = vsel %vm250_vm4, %v254_v10, 0.0  ;;  %v1612_v63 = vld [vmem:[%s2374_s1 + $0x4] sm:$0xf] }
  0x40   : > { %444 = vrot.lane.b32.xlu1 %v263_v14, %s2100_s11  ;;  %v2231_v19 = vsel %vm249_vm5, %v237_v9, 0.0  ;;  %v1808_v53 = vpack.c.bf16 %v1104_v50, %v1103_v49  ;;  %v1810_v54 = vpack.c.bf16 %v1122_v52, %v1121_v51  ;;  %v1812_v57 = vpack.c.bf16 %v1106_v56, %v1105_v55  ;;  %v265_v7 = vld [vmem:[%s2374_s1] sm:$0xf]  ;;  %v1627_v25 = vld [vmem:[%s2374_s1 + $0x10] sm:$0xf]  ;;  %v1326_v49 = vld [vmem:[#allocation2 + $0x298] sm:$0xff] }
  0x41   : > { %1801 = vmatpush3.bf16.msra.mxu1 %v1800_v40  ;;  %vm631_vm11 = vcmask 908288   ;;  %vm722_vm12 = vcmask 900096   ;;  %vm813_vm13 = vcmask 785408   ;;  %vm904_vm14 = vcmask 777216   ;;  %v1631_v31 = vld [vmem:[%s2374_s1 + $0x14] sm:$0xf] }
  0x42   : > { %272 = vrot.lane.b32.xlu0 %v238_v13, %s2099_s10  ;;  %1803 = vmatprep.subr.bf16.mxu1 %v1802_v42  ;;  %vm995_vm15 = vcmask 769024   ;;  %v1635_v37 = vld [vmem:[%s2374_s1 + $0x18] sm:$0xf]  ;;  %v1323_v41 = vld [vmem:[#allocation2 + $0x280] sm:$0xff]  ;;  %v1324_v42 = vld [vmem:[#allocation2 + $0x288] sm:$0xff]  ;;  %s1647_s9 = sshll.u32 %s2160_s22, 4 }
  0x43   : > { %v1639_v43 = vld [vmem:[%s2374_s1 + $0x1c] sm:$0xf]  ;;  %v1854_v45 = vpack.c.bf16 %v1324_v42, %v1323_v41  ;;  %v1307_v46 = vld [vmem:[#allocation2 + $0x200] sm:$0xff]  ;;  %v1328_v56 = vld [vmem:[#allocation2 + $0x2a8] sm:$0xff]  ;;  %s231_s10 = scalar_lea.vmem [#allocation5], %s230_s7  ;;  %p2389_p9 = scmp.ne.s32.totalorder %s2382_s28, 0 }
  0x44   : > { %442 = vrot.lane.b32.xlu1 %v262_v15, %s2100_s11  ;;  %v1643_v50 = vld [vmem:[%s2374_s1 + $0x20] sm:$0xf]  ;;  %v1321_v41 = vld [vmem:[#allocation2 + $0x270] sm:$0xff]  ;;  %s2108_s22 = smov [#allocation5]  }
  0x45   : > { %1805 = vmatpush3.bf16.msra.mxu1 %v1804_v47  ;;  %v1308_v47 = vld [vmem:[#allocation2 + $0x208] sm:$0xff]  ;;  %v1327_v55 = vld [vmem:[#allocation2 + $0x2a0] sm:$0xff] }
  0x46   : > { %446 = vrot.lane.b32.xlu0 %v264_v16, %s2100_s11  ;;  %1807 = vmatprep.subr.bf16.mxu1 %v1806_v48  ;;  %v1325_v48 = vld [vmem:[#allocation2 + $0x290] sm:$0xff]  ;;  %v1856_v51 = vpack.c.bf16 %v1308_v47, %v1307_v46  ;;  %s1535_s11 = sshll.u32 %s231_s10, 4  ;;  %s2333_s11 = int_to_ptr.vmem [resolvable:$true] %s1535_s11 }
  0x47   : > { %v1858_v52 = vpack.c.bf16 %v1326_v49, %v1325_v48 }
  0x48   : > { %538 = vrot.lane.b32.xlu1 %v258_v17, %s2101_s12 }
  0x49   : > { %1809 = vmatpush3.bf16.msra.mxu1 %v1808_v53  ;;  %v1309_v53 = vld [vmem:[#allocation2 + $0x210] sm:$0xff] }
  0x4a   : > { %536 = vrot.lane.b32.xlu0 %v2228_v18, %s2101_s12  ;;  %1811 = vmatprep.subr.bf16.mxu1 %v1810_v54  ;;  %v1310_v54 = vld [vmem:[#allocation2 + $0x218] sm:$0xff] }
  0x4c   : > { %627 = vrot.lane.b32.xlu1 %v254_v10, %s2102_s13 }
  0x4d   : > { %1813 = vmatpush3.bf16.msra.mxu1 %v1812_v57  ;;  %v1860_v57 = vpack.c.bf16 %v1310_v54, %v1309_v53  ;;  %v1198_v53 = vld [vmem:[#allocation2 + $0x100] sm:$0xff]  ;;  %v1199_v54 = vld [vmem:[#allocation2 + $0x108] sm:$0xff] }
  0x4e   : > { %534 = vrot.lane.b32.xlu0 %v2231_v19, %s2101_s12 }
  0x50   : > { %625 = vrot.lane.b32.xlu1 %v237_v9, %s2102_s13 }
  0x52   : > { %629 = vrot.lane.b32.xlu0 %v238_v13, %s2102_s13 }
  0x54   : > { %720 = vrot.lane.b32.xlu1 %v264_v16, %s2103_s14 }
  0x56   : > { %718 = vrot.lane.b32.xlu0 %v263_v14, %s2103_s14 }
  0x58   : > { %809 = vrot.lane.b32.xlu1 %v2228_v18, %s2104_s15 }
  0x5a   : > { %716 = vrot.lane.b32.xlu0 %v262_v15, %s2103_s14  ;;  %s2331_s14 = scalar_lea.hbm %s2378_s5, %s1647_s9 }
  0x5c   : > { %807 = vrot.lane.b32.xlu1 %v2231_v19, %s2104_s15 }
  0x5e   : > { %811 = vrot.lane.b32.xlu0 %v258_v17, %s2104_s15  ;;  %s1523_s15 = scalar_lea.sflag [#allocation4], %s230_s7 }
  0x60   : > { %902 = vrot.lane.b32.xlu1 %v238_v13, %s2105_s16  ;;  %v1619_v13 = vld [vmem:[%s2374_s1 + $0x8] sm:$0xf] }
  0x62   : > { %900 = vrot.lane.b32.xlu0 %v254_v10, %s2105_s16 }
  0x64   : > { %991 = vrot.lane.b32.xlu1 %v263_v14, %s2106_s17 }
  0x66   : > { %898 = vrot.lane.b32.xlu0 %v237_v9, %s2105_s16  ;;  %s2027_s16 = scalar_lea.vmem %s2333_s11, 16 }
  0x67   : > { %p2028_p6 = scmp.ne.s32.totalorder %s2333_s11, %s2027_s16 }
  0x68   : > { %989 = vrot.lane.b32.xlu1 %v262_v15, %s2106_s17 }
  0x69   : > { %p2029_p10 = pnand %p2028_p6, %p2389_p9 }
  0x6a   : > { %993 = vrot.lane.b32.xlu0 %v264_v16, %s2106_s17  ;;  %s2031_s17 = sshll.u32 %s2108_s22, 4  ;;  %s2032_s17 = int_to_ptr.vmem [resolvable:$false] %s2031_s17 }
  0x6b   : > { %p2030_p12 = pneg %p2029_p10  ;;  %s2033_s23 = scalar_lea.vmem %s2032_s17, 32 }
  0x6c   : > { %p2034_p2 = scmp.lt.s32.totalorder %s2333_s11, %s2032_s17  ;;  %p2035_p3 = scmp.lt.s32.totalorder %s2033_s23, %s2027_s16 }
  0x6e   : > { %1081 = vperm.xlu0 %1997, %v1078_v20   ;;  %p2036_p4 = por %p2035_p3, %p2034_p2 }
  0x70   : > { %p2037_p7 = pnand %p2036_p4, %p2030_p12 }
  0xae   : > { %v269_v58 = vpop.permute.xlu1 %268 }
  0xb0   : > { %v271_v59 = vpop.permute.xlu0 %270 }
  0xb1   : > { %v275_v0 = vsel %vm274_vm6, %v269_v58, %v271_v59  ;;  %v1311_v58 = vld [vmem:[#allocation2 + $0x220] sm:$0xff] }
  0xb2   : > { %v445_v60 = vpop.permute.xlu1 %444 }
  0xb4   : > { %v273_v61 = vpop.permute.xlu0 %272 }
  0xb5   : > { %v276_v62 = vsel %vm274_vm6, %v271_v59, %v273_v61  ;;  %v1312_v59 = vld [vmem:[#allocation2 + $0x228] sm:$0xff]  ;;  %v1330_v61 = vld [vmem:[#allocation2 + $0x2b8] sm:$0xff] }
  0xb6   : > { %1613 = vmatprep.subr.msk.mxu0 %vm281_vm7, %v276_v62  ;;  %v443_v3 = vpop.permute.xlu1 %442  ;;  %v1864_v62 = vpack.c.bf16 %v1312_v59, %v1311_v58  ;;  %v1824_v59 = vpack.c.bf16 %v1199_v54, %v1198_v53  ;;  %v1434_v53 = vld [vmem:[#allocation2 + $0x3a0] sm:$0xff]  ;;  %v1435_v54 = vld [vmem:[#allocation2 + $0x3a8] sm:$0xff] }
  0xb7   : > { %1614 = vmatpush1.msk.msra.mxu0 %vm281_vm7, %v275_v0  ;;  %v449_v8 = vsel %vm448_vm9, %v443_v3, %v445_v60  ;;  %v1313_v0 = vld [vmem:[#allocation2 + $0x230] sm:$0xff]  ;;  %v1331_v3 = vld [vmem:[#allocation2 + $0x2c0] sm:$0xff] }
  0xb8   : > { %1615 = vmatmul.mubr.msk.f32.vlgmr.msra.gmra.mrb[0].mxu0 %vm277_vm8, %v1612_v63  ;;  %1616 = vmatprep.subr.msk.mxu0 %vm281_vm7, %v2228_v18  ;;  %v447_v1 = vpop.permute.xlu0 %446 }
  0xb9   : > { %1617 = vmatpush1.msk.msra.mxu0 %vm281_vm7, %v2231_v19  ;;  %v450_v4 = vsel %vm448_vm9, %v445_v60, %v447_v1  ;;  %430 = vmatprep.mubr.f32.mxu0 %v2098_v2  ;;  %v1623_v19 = vld [vmem:[%s2374_s1 + $0xc] sm:$0xf]  ;;  %v1329_v60 = vld [vmem:[#allocation2 + $0x2b0] sm:$0xff]  ;;  %v1314_v1 = vld [vmem:[#allocation2 + $0x238] sm:$0xff] }
  0xba   : > { %1620 = vmatprep.subr.msk.mxu0 %vm281_vm7, %v450_v4  ;;  %v539_v6 = vpop.permute.xlu1 %538  ;;  %v1866_v63 = vpack.c.bf16 %v1330_v61, %v1329_v60  ;;  %v1332_v4 = vld [vmem:[#allocation2 + $0x2c8] sm:$0xff]  ;;  %v1200_v61 = vld [vmem:[#allocation2 + $0x110] sm:$0xff] }
  0xbc   : > { %v537_v5 = vpop.permute.xlu0 %536 }
  0xbd   : > { %v542_v9 = vsel %vm540_vm10, %v537_v5, %v539_v6  ;;  %v1870_v6 = vpack.c.bf16 %v1332_v4, %v1331_v3 }
  0xbe   : > { %v628_v11 = vpop.permute.xlu1 %627 }
  0xc0   : > { %1618 = vmatmul.mubr.msk.f32.vlgmr.msra.gmra.mrb[0].mxu0 %vm277_vm8, %v265_v7  ;;  %v535_v10 = vpop.permute.xlu0 %534  ;;  %v1315_v7 = vld [vmem:[#allocation2 + $0x240] sm:$0xff] }
  0xc1   : > { %1621 = vmatpush1.msk.msra.mxu0 %vm281_vm7, %v449_v8  ;;  %522 = vmatprep.mubr.f32.mxu0 %v2098_v2  ;;  %v541_v14 = vsel %vm540_vm10, %v535_v10, %v537_v5  ;;  %v1868_v5 = vpack.c.bf16 %v1314_v1, %v1313_v0  ;;  %v1316_v8 = vld [vmem:[#allocation2 + $0x248] sm:$0xff]  ;;  %v1333_v10 = vld [vmem:[#allocation2 + $0x2d0] sm:$0xff] }
  0xc2   : > { %1624 = vmatprep.subr.msk.mxu0 %vm281_vm7, %v542_v9  ;;  %v626_v16 = vpop.permute.xlu1 %625  ;;  %v1872_v9 = vpack.c.bf16 %v1316_v8, %v1315_v7  ;;  %v1219_v0 = vld [vmem:[#allocation2 + $0x1a8] sm:$0xff]  ;;  %v1220_v7 = vld [vmem:[#allocation2 + $0x1b0] sm:$0xff]  ;;  %v1221_v8 = vld [vmem:[#allocation2 + $0x1b8] sm:$0xff] }
  0xc3   : > { %v2271_v20 = vsel %vm631_vm11, %v626_v16, %v628_v11  ;;  %v1317_v16 = vld [vmem:[#allocation2 + $0x250] sm:$0xff] }
  0xc4   : > { %v630_v12 = vpop.permute.xlu0 %629 }
  0xc5   : > { %v2261_v15 = vsel %vm631_vm11, %v628_v11, %v630_v12  ;;  %v1334_v11 = vld [vmem:[#allocation2 + $0x2d8] sm:$0xff] }
  0xc6   : > { %v721_v18 = vpop.permute.xlu1 %720  ;;  %v1874_v12 = vpack.c.bf16 %v1334_v11, %v1333_v10  ;;  %v1834_v10 = vpack.c.bf16 %v1221_v8, %v1220_v7  ;;  %v1204_v11 = vld [vmem:[#allocation2 + $0x130] sm:$0xff]  ;;  %v1441_v7 = vld [vmem:[#allocation2 + $0x3d8] sm:$0xff] }
  0xc8   : > { %1622 = vmatmul.mubr.msk.f32.vlgmr.msra.gmra.mrb[0].mxu0 %vm277_vm8, %v1619_v13  ;;  %v719_v17 = vpop.permute.xlu0 %718  ;;  %v1123_v13 = vld [vmem:[#allocation2 + $0xe0] sm:$0xff] }
  0xc9   : > { %1625 = vmatpush1.msk.msra.mxu0 %vm281_vm7, %v541_v14  ;;  %614 = vmatprep.mubr.f32.mxu0 %v2098_v2  ;;  %v724_v21 = vsel %vm722_vm12, %v719_v17, %v721_v18  ;;  %v1124_v14 = vld [vmem:[#allocation2 + $0xe8] sm:$0xff]  ;;  %v1318_v18 = vld [vmem:[#allocation2 + $0x258] sm:$0xff] }
  0xca   : > { %1628 = vmatprep.subr.msk.mxu0 %vm281_vm7, %v2261_v15  ;;  %v810_v23 = vpop.permute.xlu1 %809 }
  0xcc   : > { %v717_v22 = vpop.permute.xlu0 %716 }
  0xcd   : > { %v723_v26 = vsel %vm722_vm12, %v717_v22, %v719_v17  ;;  %v1814_v17 = vpack.c.bf16 %v1124_v14, %v1123_v13  ;;  %v1876_v22 = vpack.c.bf16 %v1318_v18, %v1317_v16  ;;  %v1222_v13 = vld [vmem:[#allocation2 + $0x1c0] sm:$0xff]  ;;  %v1223_v14 = vld [vmem:[#allocation2 + $0x1c8] sm:$0xff] }
  0xce   : > { %v808_v28 = vpop.permute.xlu1 %807  ;;  %v1206_v18 = vld [vmem:[#allocation2 + $0x140] sm:$0xff] }
  0xcf   : > { %v814_v32 = vsel %vm813_vm13, %v808_v28, %v810_v23  ;;  %1815 = vmatprep.subr.bf16.mxu1 %v1814_v17  ;;  %v1126_v28 = vld [vmem:[#allocation2 + $0xf8] sm:$0xff]  ;;  %v1838_v17 = vpack.c.bf16 %v1223_v14, %v1222_v13  ;;  %v1443_v13 = vld [vmem:[#allocation2 + $0x3e8] sm:$0xff] }
  0xd0   : > { %1626 = vmatmul.mubr.msk.f32.vlgmr.msra.gmra.mrb[0].mxu0 %vm277_vm8, %v1623_v19  ;;  %v812_v24 = vpop.permute.xlu0 %811  ;;  %v1107_v19 = vld [vmem:[#allocation2 + $0x60] sm:$0xff] }
  0xd1   : > { %1629 = vmatpush1.msk.msra.mxu0 %vm281_vm7, %v2271_v20  ;;  %705 = vmatprep.mubr.f32.mxu0 %v2098_v2  ;;  %v815_v27 = vsel %vm813_vm13, %v810_v23, %v812_v24  ;;  %v1335_v24 = vld [vmem:[#allocation2 + $0x2e0] sm:$0xff] }
  0xd2   : > { %1632 = vmatprep.subr.msk.mxu0 %vm281_vm7, %v724_v21  ;;  %v903_v30 = vpop.permute.xlu1 %902  ;;  %v1108_v21 = vld [vmem:[#allocation2 + $0x68] sm:$0xff] }
  0xd3   : > { %v1816_v23 = vpack.c.bf16 %v1108_v21, %v1107_v19  ;;  %v1207_v19 = vld [vmem:[#allocation2 + $0x148] sm:$0xff]  ;;  %v1224_v21 = vld [vmem:[#allocation2 + $0x1d0] sm:$0xff] }
  0xd4   : > { %v901_v29 = vpop.permute.xlu0 %900 }
  0xd5   : > { %v906_v33 = vsel %vm904_vm14, %v901_v29, %v903_v30  ;;  %1817 = vmatpush3.bf16.msra.mxu1 %v1816_v23  ;;  %v1840_v23 = vpack.c.bf16 %v1207_v19, %v1206_v18  ;;  %v1427_v18 = vld [vmem:[#allocation2 + $0x368] sm:$0xff]  ;;  %v1444_v19 = vld [vmem:[#allocation2 + $0x3f0] sm:$0xff] }
  0xd6   : > { %v992_v36 = vpop.permute.xlu1 %991 }
  0xd8   : > { %1630 = vmatmul.mubr.msk.f32.vlgmr.msra.gmra.mrb[0].mxu0 %vm277_vm8, %v1627_v25  ;;  %v899_v34 = vpop.permute.xlu0 %898  ;;  %v1336_v25 = vld [vmem:[#allocation2 + $0x2e8] sm:$0xff] }
  0xd9   : > { %1633 = vmatpush1.msk.msra.mxu0 %vm281_vm7, %v723_v26  ;;  %796 = vmatprep.mubr.f32.mxu0 %v2098_v2  ;;  %v905_v38 = vsel %vm904_vm14, %v899_v34, %v901_v29  ;;  %v1878_v26 = vpack.c.bf16 %v1336_v25, %v1335_v24  ;;  %v1319_v29 = vld [vmem:[#allocation2 + $0x260] sm:$0xff]  ;;  %v1208_v25 = vld [vmem:[#allocation2 + $0x150] sm:$0xff] }
  0xda   : > { %1636 = vmatprep.subr.msk.mxu0 %vm281_vm7, %v815_v27  ;;  %v990_v40 = vpop.permute.xlu1 %989  ;;  %v1125_v27 = vld [vmem:[#allocation2 + $0xf0] sm:$0xff] }
  0xdb   : > { %v996_v44 = vsel %vm995_vm15, %v990_v40, %v992_v36  ;;  %v1818_v30 = vpack.c.bf16 %v1126_v28, %v1125_v27  ;;  %v1215_v40 = vld [vmem:[#allocation2 + $0x188] sm:$0xff]  ;;  %v1226_v27 = vld [vmem:[#allocation2 + $0x1e0] sm:$0xff] }
  0xdc   : > { %v994_v35 = vpop.permute.xlu0 %993  ;;  %v1227_v28 = vld [vmem:[#allocation2 + $0x1e8] sm:$0xff] }
  0xdd   : > { %v997_v39 = vsel %vm995_vm15, %v992_v36, %v994_v35  ;;  %1819 = vmatprep.subr.bf16.mxu1 %v1818_v30  ;;  %v1337_v36 = vld [vmem:[#allocation2 + $0x2f0] sm:$0xff]  ;;  %v1846_v30 = vpack.c.bf16 %v1227_v28, %v1226_v27 }
  0xe0   : > { %1634 = vmatmul.mubr.msk.f32.vlgmr.msra.gmra.mrb[0].mxu0 %vm277_vm8, %v1631_v31  ;;  %v1320_v31 = vld [vmem:[#allocation2 + $0x268] sm:$0xff] }
  0xe1   : > { %1637 = vmatpush1.msk.msra.mxu0 %vm281_vm7, %v814_v32  ;;  %887 = vmatprep.mubr.f32.mxu0 %v2098_v2  ;;  %v1109_v32 = vld [vmem:[#allocation2 + $0x70] sm:$0xff]  ;;  %v1880_v34 = vpack.c.bf16 %v1320_v31, %v1319_v29  ;;  %v1210_v31 = vld [vmem:[#allocation2 + $0x160] sm:$0xff] }
  0xe2   : > { %1640 = vmatprep.subr.msk.mxu0 %vm281_vm7, %v906_v33  ;;  %v1110_v33 = vld [vmem:[#allocation2 + $0x78] sm:$0xff] }
  0xe3   : > { %v1820_v35 = vpack.c.bf16 %v1110_v33, %v1109_v32  ;;  %v1211_v32 = vld [vmem:[#allocation2 + $0x168] sm:$0xff]  ;;  %v1228_v33 = vld [vmem:[#allocation2 + $0x1f0] sm:$0xff] }
  0xe5   : > { %1821 = vmatpush3.bf16.msra.mxu1 %v1820_v35  ;;  %v1848_v35 = vpack.c.bf16 %v1211_v32, %v1210_v31 }
  0xe8   : > { %1638 = vmatmul.mubr.msk.f32.vlgmr.msra.gmra.mrb[0].mxu0 %vm277_vm8, %v1635_v37  ;;  %v1338_v37 = vld [vmem:[#allocation2 + $0x2f8] sm:$0xff] }
  0xe9   : > { %1641 = vmatpush1.msk.msra.mxu0 %vm281_vm7, %v905_v38  ;;  %978 = vmatprep.mubr.f32.mxu0 %v2098_v2  ;;  %v1882_v38 = vpack.c.bf16 %v1338_v37, %v1337_v36  ;;  %v1212_v37 = vld [vmem:[#allocation2 + $0x170] sm:$0xff] }
  0xea   : > { %1644 = vmatprep.subr.msk.mxu0 %vm281_vm7, %v997_v39  ;;  %v1214_v39 = vld [vmem:[#allocation2 + $0x180] sm:$0xff] }
  0xeb   : > { %v1822_v42 = vpack.c.bf16 %v1215_v40, %v1214_v39  ;;  %v1430_v39 = vld [vmem:[#allocation2 + $0x380] sm:$0xff]  ;;  %v1431_v40 = vld [vmem:[#allocation2 + $0x388] sm:$0xff] }
  0xed   : > { %1823 = vmatprep.subr.bf16.mxu1 %v1822_v42  ;;  %v1886_v42 = vpack.c.bf16 %v1431_v40, %v1430_v39 }
  0xf0   : > { %1642 = vmatmul.mubr.msk.f32.vlgmr.msra.gmra.mrb[0].mxu0 %vm277_vm8, %v1639_v43  ;;  %v1322_v43 = vld [vmem:[#allocation2 + $0x278] sm:$0xff] }
  0xf1   : > { %1645 = vmatpush1.msk.msra.mxu0 %vm281_vm7, %v996_v44  ;;  %1069 = vmatprep.mubr.f32.mxu0 %v2098_v2  ;;  %v1862_v2 = vpack.c.bf16 %v1328_v56, %v1327_v55  ;;  %v1884_v44 = vpack.c.bf16 %v1322_v43, %v1321_v41  ;;  %v1216_v56 = vld [vmem:[#allocation2 + $0x190] sm:$0xff]  ;;  %v1414_v43 = vld [vmem:[#allocation2 + $0x300] sm:$0xff] }
  0xf2   : > { %1855 = vmatprep.subr.bf16.mxu0 %v1854_v45  ;;  %v1082_v45 = vpop.permute.xlu0 %1081 }
  0xf8   : > { %1646 = vmatmul.mubr.msk.f32.vlgmr.msra.gmra.mrb[0].mxu0 %vm277_vm8, %v1643_v50 }
  0xf9   : > { %1857 = vmatpush3.bf16.msra.mxu0 %v1856_v51 }
  0xfa   : > { %1859 = vmatprep.subr.bf16.mxu0 %v1858_v52 }
  0xfd   : > { %1861 = vmatpush3.bf16.msra.mxu0 %v1860_v57  ;;  %v1217_v57 = vld [vmem:[#allocation2 + $0x198] sm:$0xff] }
  0xfe   : > { %1863 = vmatprep.subr.bf16.mxu0 %v1862_v2  ;;  %v1826_v60 = vpack.c.bf16 %v1217_v57, %v1216_v56  ;;  %v1894_v56 = vpack.c.bf16 %v1435_v54, %v1434_v53  ;;  %v1418_v57 = vld [vmem:[#allocation2 + $0x320] sm:$0xff] }
 0x101   : > { %1865 = vmatpush3.bf16.msra.mxu0 %v1864_v62  ;;  %v1201_v62 = vld [vmem:[#allocation2 + $0x118] sm:$0xff] }
 0x102   : > { %1867 = vmatprep.subr.bf16.mxu0 %v1866_v63  ;;  %v1218_v63 = vld [vmem:[#allocation2 + $0x1a0] sm:$0xff]  ;;  %v1828_v3 = vpack.c.bf16 %v1201_v62, %v1200_v61  ;;  %v1437_v61 = vld [vmem:[#allocation2 + $0x3b8] sm:$0xff] }
 0x103   : > { %v1830_v4 = vpack.c.bf16 %v1219_v0, %v1218_v63  ;;  %v1421_v63 = vld [vmem:[#allocation2 + $0x338] sm:$0xff]  ;;  %v1438_v0 = vld [vmem:[#allocation2 + $0x3c0] sm:$0xff] }
 0x105   : > { %1869 = vmatpush3.bf16.msra.mxu0 %v1868_v5  ;;  %v1202_v5 = vld [vmem:[#allocation2 + $0x120] sm:$0xff] }
 0x106   : > { %1871 = vmatprep.subr.bf16.mxu0 %v1870_v6  ;;  %v1203_v6 = vld [vmem:[#allocation2 + $0x128] sm:$0xff] }
 0x109   : > { %1873 = vmatpush3.bf16.msra.mxu0 %v1872_v9  ;;  %v1832_v9 = vpack.c.bf16 %v1203_v6, %v1202_v5  ;;  %v1423_v5 = vld [vmem:[#allocation2 + $0x348] sm:$0xff]  ;;  %v1440_v6 = vld [vmem:[#allocation2 + $0x3d0] sm:$0xff] }
 0x10a   : > { %1875 = vmatprep.subr.bf16.mxu0 %v1874_v12  ;;  %v1205_v12 = vld [vmem:[#allocation2 + $0x138] sm:$0xff] }
 0x10b   : > { %v1836_v16 = vpack.c.bf16 %v1205_v12, %v1204_v11  ;;  %v1425_v11 = vld [vmem:[#allocation2 + $0x358] sm:$0xff]  ;;  %v1442_v12 = vld [vmem:[#allocation2 + $0x3e0] sm:$0xff] }
 0x10d   : > { %1877 = vmatpush3.bf16.msra.mxu0 %v1876_v22  ;;  %v1225_v22 = vld [vmem:[#allocation2 + $0x1d8] sm:$0xff] }
 0x10e   : > { %1879 = vmatprep.subr.bf16.mxu0 %v1878_v26  ;;  %v1842_v24 = vpack.c.bf16 %v1225_v22, %v1224_v21  ;;  %v1209_v26 = vld [vmem:[#allocation2 + $0x158] sm:$0xff] }
 0x10f   : > { %v1844_v29 = vpack.c.bf16 %v1209_v26, %v1208_v25  ;;  %v1445_v21 = vld [vmem:[#allocation2 + $0x3f8] sm:$0xff] }
 0x110   : > { %v1429_v25 = vld [vmem:[#allocation2 + $0x378] sm:$0xff] }
 0x111   : > { %1881 = vmatpush3.bf16.msra.mxu0 %v1880_v34  ;;  %v1229_v34 = vld [vmem:[#allocation2 + $0x1f8] sm:$0xff] }
 0x112   : > { %1883 = vmatprep.subr.bf16.mxu0 %v1882_v38  ;;  %v1850_v36 = vpack.c.bf16 %v1229_v34, %v1228_v33  ;;  %v1213_v38 = vld [vmem:[#allocation2 + $0x178] sm:$0xff]  ;;  %v1094_v34 = vld [vmem:[%s2377_s4] sm:$0x1] }
 0x113   : > { %v1852_v41 = vpack.c.bf16 %v1213_v38, %v1212_v37 }
 0x115   : > { %1885 = vmatpush3.bf16.msra.mxu0 %v1884_v44  ;;  %v1415_v44 = vld [vmem:[#allocation2 + $0x308] sm:$0xff] }
 0x1cb   : > { %v1071_v46 = vpop.f32.mrb[0].mxu0 }
 0x1cc   : > { %v1084_v47 = vadd.f32 %v1082_v45, %v1071_v46  ;;  %v1073_v48 = vpop.f32.mrb[1].mxu0  ;;  %v1433_v46 = vld [vmem:[#allocation2 + $0x398] sm:$0xff] }
 0x1cd   : > { %v1085_v49 = vadd.f32 %v1082_v45, %v1073_v48  ;;  %v1432_v45 = vld [vmem:[#allocation2 + $0x390] sm:$0xff] }
 0x1ce   : > { %v1088_v50 = vadd.f32 %v1084_v47, %v2271_v20  ;;  %v1888_v47 = vpack.c.bf16 %v1415_v44, %v1414_v43 }
 0x1cf   : > { %v1089_v51 = vadd.f32 %v1085_v49, %v2261_v15  ;;  %v1890_v49 = vpack.c.bf16 %v1433_v46, %v1432_v45 }
 0x1d0   : > { %v1090_v52 = vmax.f32 %v1088_v50, 0.0  ;;  %v1416_v50 = vld [vmem:[#allocation2 + $0x310] sm:$0xff] }
 0x1d1   : > { %v1091_v55 = vmax.f32 %v1089_v51, 0.0  ;;  %v1417_v51 = vld [vmem:[#allocation2 + $0x318] sm:$0xff] }
 0x1d2   : > { %v2311_v2 = vmin.f32 %v1090_v52, 1.0 }
 0x1d3   : > { %v2313_v58 = vmin.f32 %v1091_v55, 1.0  ;;  %v1892_v55 = vpack.c.bf16 %v1417_v51, %v1416_v50 }
 0x1d4   : > { %v1339_v1 = vrot.slane %v2311_v2, 2  ;;  %v1232_v48 = vrot.slane %v2311_v2, 1  ;;  %v1446_v27 = vrot.slane %v2311_v2, 3 }
 0x1d5   : > { %1191 = vmatprep.mubr.f32.mxu1 %v2313_v58  ;;  %v1233_v20 = vrot.slane %v2313_v58, 1  ;;  %v1340_v15 = vrot.slane %v2313_v58, 2  ;;  %v1447_v52 = vrot.slane %v2313_v58, 3  ;;  %v1439_v58 = vld [vmem:[#allocation2 + $0x3c8] sm:$0xff] }
 0x1d6   : > { %1192 = vmatmul.mubr.f32.vlgmr.msra.gmra.mrb[0].mxu1 %v2311_v2 }
 0x1d7   : > { %1825 = vmatpush3.bf16.msra.mxu1 %v1824_v59  ;;  %1300 = vmatprep.mubr.f32.mxu1 %v1233_v20  ;;  %v1419_v59 = vld [vmem:[#allocation2 + $0x328] sm:$0xff] }
 0x1d8   : > { %1407 = vmatprep.mubr.f32.mxu0 %v1340_v15  ;;  %1827 = vmatprep.subr.bf16.mxu1 %v1826_v60  ;;  %v1436_v60 = vld [vmem:[#allocation2 + $0x3b0] sm:$0xff]  ;;  %v1896_v62 = vpack.c.bf16 %v1419_v59, %v1418_v57 }
 0x1d9   : > { %1408 = vmatmul.mubr.f32.vlgmr.msra.gmra.mrb[2].mxu0 %v1339_v1  ;;  %v1898_v20 = vpack.c.bf16 %v1437_v61, %v1436_v60  ;;  %v1420_v15 = vld [vmem:[#allocation2 + $0x330] sm:$0xff] }
 0x1da   : > { %v1900_v1 = vpack.c.bf16 %v1421_v63, %v1420_v15 }
 0x1db   : > { %1829 = vmatpush3.bf16.msra.mxu1 %v1828_v3  ;;  %v1902_v3 = vpack.c.bf16 %v1439_v58, %v1438_v0 }
 0x1dc   : > { %1831 = vmatprep.subr.bf16.mxu1 %v1830_v4  ;;  %v1422_v4 = vld [vmem:[#allocation2 + $0x340] sm:$0xff] }
 0x1dd   : > { %v1904_v8 = vpack.c.bf16 %v1423_v5, %v1422_v4 }
 0x1df   : > { %1833 = vmatpush3.bf16.msra.mxu1 %v1832_v9  ;;  %v1906_v9 = vpack.c.bf16 %v1441_v7, %v1440_v6 }
 0x1e0   : > { %1835 = vmatprep.subr.bf16.mxu1 %v1834_v10  ;;  %v1424_v10 = vld [vmem:[#allocation2 + $0x350] sm:$0xff] }
 0x1e1   : > { %v1908_v14 = vpack.c.bf16 %v1425_v11, %v1424_v10 }
 0x1e3   : > { %1837 = vmatpush3.bf16.msra.mxu1 %v1836_v16  ;;  %v1910_v16 = vpack.c.bf16 %v1443_v13, %v1442_v12 }
 0x1e4   : > { %1839 = vmatprep.subr.bf16.mxu1 %v1838_v17  ;;  %v1426_v17 = vld [vmem:[#allocation2 + $0x360] sm:$0xff] }
 0x1e5   : > { %v1912_v22 = vpack.c.bf16 %v1427_v18, %v1426_v17 }
 0x1e7   : > { %1841 = vmatpush3.bf16.msra.mxu1 %v1840_v23  ;;  %v1914_v23 = vpack.c.bf16 %v1445_v21, %v1444_v19 }
 0x1e8   : > { %1843 = vmatprep.subr.bf16.mxu1 %v1842_v24  ;;  %v1428_v24 = vld [vmem:[#allocation2 + $0x370] sm:$0xff] }
 0x1e9   : > { %v1916_v26 = vpack.c.bf16 %v1429_v25, %v1428_v24 }
 0x1eb   : > { %1845 = vmatpush3.bf16.msra.mxu1 %v1844_v29 }
 0x1ec   : > { %1847 = vmatprep.subr.bf16.mxu1 %v1846_v30 }
 0x1ef   : > { %1849 = vmatpush3.bf16.msra.mxu1 %v1848_v35 }
 0x1f0   : > { %1851 = vmatprep.subr.bf16.mxu1 %v1850_v36 }
 0x1f3   : > { %1853 = vmatpush3.bf16.msra.mxu1 %v1852_v41 }
 0x1f4   : > { %1887 = vmatprep.subr.bf16.mxu1 %v1886_v42 }
 0x1f6   : > { %1301 = vmatmul.mubr.f32.vlgmr.msra.gmra.mrb[2].mxu1 %v1232_v48 }
 0x1f7   : > { %1889 = vmatpush3.bf16.msra.mxu1 %v1888_v47  ;;  %1514 = vmatprep.mubr.f32.mxu1 %v1447_v52 }
 0x1f8   : > { %1891 = vmatprep.subr.bf16.mxu1 %v1890_v49 }
 0x1fb   : > { %1893 = vmatpush3.bf16.msra.mxu1 %v1892_v55 }
 0x1fc   : > { %1895 = vmatprep.subr.bf16.mxu1 %v1894_v56 }
 0x1ff   : > { %1897 = vmatpush3.bf16.msra.mxu1 %v1896_v62 }
 0x200   : > { %1899 = vmatprep.subr.bf16.mxu1 %v1898_v20 }
 0x203   : > { %1901 = vmatpush3.bf16.msra.mxu1 %v1900_v1 }
 0x204   : > { %1903 = vmatprep.subr.bf16.mxu1 %v1902_v3 }
 0x207   : > { %1905 = vmatpush3.bf16.msra.mxu1 %v1904_v8 }
 0x208   : > { %1907 = vmatprep.subr.bf16.mxu1 %v1906_v9 }
 0x20b   : > { %1909 = vmatpush3.bf16.msra.mxu1 %v1908_v14 }
 0x20c   : > { %1911 = vmatprep.subr.bf16.mxu1 %v1910_v16 }
 0x20f   : > { %1913 = vmatpush3.bf16.msra.mxu1 %v1912_v22 }
 0x210   : > { %1915 = vmatprep.subr.bf16.mxu1 %v1914_v23 }
 0x213   : > { %1917 = vmatpush3.bf16.msra.mxu1 %v1916_v26 }
 0x216   : > { %1515 = vmatmul.mubr.f32.vlgmr.msra.gmra.mrb[4].mxu1 %v1446_v27 }
 0x2a9   : > { %v1682_v28 = vpop.f32.mrb[0].mxu1 }
 0x2aa   : > { %v1683_v29 = vpop.f32.mrb[1].mxu1 }
 0x2ab   : > { %v1684_v30 = vadd.f32 %v1683_v29, %v1682_v28 }
 0x2ac   : > { %v1752_v31 = vpop.f32.mrb[2].mxu0 }
 0x2ad   : > { %v1753_v32 = vpop.f32.mrb[3].mxu0  ;;  %v1197_v37 = vadd.f32 %v1684_v30, %v1094_v34 }
 0x2ae   : > { %v1754_v33 = vadd.f32 %v1753_v32, %v1752_v31 }
 0x2c9   : > { %v1717_v35 = vpop.f32.mrb[2].mxu1 }
 0x2ca   : > { %v1718_v36 = vpop.f32.mrb[3].mxu1 }
 0x2cb   : > { %v1719_v38 = vadd.f32 %v1718_v36, %v1717_v35 }
 0x2cd   : > { %v1306_v39 = vadd.f32 %v1719_v38, %v1197_v37 }
 0x2cf   : > { %v1413_v40 = vadd.f32 %v1754_v33, %v1306_v39 }
 0x2e9   : > { %v1787_v2 = vpop.f32.mrb[4].mxu1 }
 0x2ea   : > { %v1788_v41 = vpop.f32.mrb[5].mxu1 }
 0x2eb   : > { %v1789_v42 = vadd.f32 %v1788_v41, %v1787_v2 }
 0x2ed   : > { %v1520_v43 = vadd.f32 %v1789_v42, %v1413_v40 }
 0x2ef   : > { %1521 = vst [vmem:[%s231_s10] sm:$0x1] %v1520_v43 }
 0x2f0   : > { %2040 = shalt.err (!%p2037_p7)
}
 0x2f1   : > { %s2041_s25 = scalar_lea.hbm %s2331_s14, 16  ;;  %s2045_s8 = scalar_lea.hbm %s2378_s5, 32 }
 0x2f2   : > { %p2042_p8 = scmp.ne.s32.totalorder %s2331_s14, %s2041_s25  ;;  %p2046_p1 = scmp.lt.u32.totalorder %s2331_s14, %s2378_s5 }
 0x2f3   : > { %p2047_p0 = scmp.lt.u32.totalorder %s2045_s8, %s2041_s25  ;;  %p2049_p6 = scmp.lt.u32.totalorder %s2041_s25, %s2331_s14 }
 0x2f4   : > { %p2043_p11 = pnand %p2042_p8, %p2389_p9 }
 0x2f5   : > { %p2048_p5 = por %p2047_p0, %p2046_p1 }
 0x2f6   : > { %p2044_p13 = pneg %p2043_p11 }
 0x2f7   : > { %p2050_p10 = por %p2049_p6, %p2048_p5 }
 0x2f9   : > { %p2051_p12 = pnand %p2050_p10, %p2044_p13 }
 0x2fb   : > { %2054 = shalt.err (!%p2051_p12)
}
 0x2fc   : > { %1939 = dma.vmem_to_hbm [thread:$0]  (%p2389_p9), %s2333_s11, 16, %s2331_s14, %s1523_s15  }
 0x2fd PF: > { %p1951_p2 = scmp.ge.s32.totalorder %s2093_s21, 2  ;;  %s1547_s9 = sand.u32 1, %s2081_s18  }
 0x2fe   : > { %p2390_p3 = scmp.ne.s32.totalorder %s2383_s29, 0  ;;  %s1548_s10 = scalar_lea.sflag [#allocation4], %s1547_s9 }
 0x300   : > { %p1946_p4 = pnand %p1951_p2, %p2390_p3 }
 0x302   : > { %2076 = dma.done.wait (!%p1946_p4), %s1548_s10, 16  }
 0x303   : > { %2078 = vsyncadd (!%p1946_p4), %s1548_s10, 4294967280  ;;  %p16_p7 = scmp.ge.s32.totalorder %s2164_s24, 4   ;;  %s2391_s18 = smov %s2085_s19 }
 0x304   : > { %s2392_s19 = smov %s2089_s20  ;;  %s2393_s20 = smov %s2175_s27 }
 0x305   : > { %s2394_s21 = smov %s2164_s24  ;;  %18 = sbr.rel (!%p16_p7) target bundleno = 4 (0x4), region = 88 }
 0x30c   :  { %1552 = vsyncpa [#allocation3], 1 }
 0x30d   :  { %1554 = vsyncpa [#allocation3 + $0x1], 1 }
 0x30e   :  { %1555 = vsyncpa [#allocation4], 1 }
 0x30f   :  { %1557 = vsyncpa [#allocation4 + $0x1], 1 }

</bundles_post_ra>
